<compile_context>
chip_gen: v7x
topology: tpu7x:2x2x1
jax: 0.10.0
libtpu: 0.0.40
codegen_flags: <defaults>
</compile_context>

<pallas_src>
import jax
import jax.numpy as jnp
from jax import lax
from jax.experimental import pallas as pl
from jax.experimental.pallas import tpu as pltpu


def _shapes(x_shape, w_shape):
    B, C, T, H, W = x_shape
    d_model, Cw, tp, ph, pw = w_shape
    assert C == Cw, "channel mismatch between input and conv weight"
    Tn, Hn, Wn = T // tp, H // ph, W // pw
    K = C * tp * ph * pw
    return B, C, Tn, Hn, Wn, tp, ph, pw, K, d_model


def _prep_weight(conv_w, conv_b, dtype):
    d_model = conv_w.shape[0]
    K = conv_w.size // d_model
    # k-order = (c, dt, dh, dw), matching both patch layouts below.
    w2d = conv_w.reshape(d_model, K).T.astype(dtype)        # (K, d_model)
    b2d = conv_b.reshape(1, d_model).astype(jnp.float32)    # bias kept f32
    return w2d, b2d


# --------------------------------------------------------------------------- #
# Preferred path: patch extraction fused into the kernel (no HBM im2col).     #
# --------------------------------------------------------------------------- #
def _forward_fused(x, conv_w, conv_b):
    B, C, Tn, Hn, Wn, tp, ph, pw, K, d_model = _shapes(x.shape, conv_w.shape)
    Hc, Wc = Hn * ph, Wn * pw
    ntok_blk = Hn * Wn                       # tokens produced per grid step

    # Lane-dense output: (ntok_blk, d_model) and (R, 128) share the same HBM
    # byte layout, so storing 128-wide rows avoids masked vst when d_model<128
    # (biggest single store-side lever, esp. on v5e with 1 store slot).
    repack = (d_model % 128 != 0) and ((ntok_blk * d_model) % 128 == 0)
    R = (ntok_blk * d_model) // 128 if repack else ntok_blk
    out_cols = 128 if repack else d_model

    # Conv3d with stride == kernel silently drops any remainder.
    xc = x[:, :, :Tn * tp, :Hc, :Wc]
    w2d, b2d = _prep_weight(conv_w, conv_b, jnp.bfloat16)

    def kernel(x_ref, w_ref, b_ref, o_ref):
        # x_ref : (C, tp, Hc, Wc)  -- one raw input slab for one (batch, t') step
        xf = x_ref[...].astype(jnp.float32)
        x6 = xf.reshape(C, tp, Hn, ph, Wn, pw)
        # VMEM-local im2col: tokens (hn, wn) on rows, features (c, dt, dh, dw) on cols.
        pat = jnp.transpose(x6, (2, 4, 0, 1, 3, 5)).reshape(ntok_blk, K)
        acc = jnp.dot(pat.astype(jnp.bfloat16), w_ref[...],
                      preferred_element_type=jnp.float32) + b_ref[...]
        o_ref[...] = acc.reshape(R, out_cols)

    # Weight / bias blocks are tiny (bf16) and have constant index maps, so
    # their (double-buffered) footprint is negligible next to the x slab.
    out = pl.pallas_call(
        kernel,
        out_shape=jax.ShapeDtypeStruct((B, Tn, R, out_cols), jnp.float32),
        grid=(B, Tn),
        in_specs=[
            pl.BlockSpec((None, C, tp, Hc, Wc), lambda b, t: (b, 0, t, 0, 0)),
            pl.BlockSpec((K, d_model), lambda b, t: (0, 0)),
            pl.BlockSpec((1, d_model), lambda b, t: (0, 0)),
        ],
        out_specs=pl.BlockSpec((None, None, R, out_cols),
                               lambda b, t: (b, t, 0, 0)),
        compiler_params=pltpu.CompilerParams(
            dimension_semantics=("parallel", "parallel")),
    )(xc, w2d, b2d)

    return out.reshape(B, Tn * Hn * Wn, d_model)


# --------------------------------------------------------------------------- #
# Fallback path: wrapper-side im2col (bf16) + plain tiled matmul kernel.      #
# --------------------------------------------------------------------------- #
def _forward_im2col(x, conv_w, conv_b, *, tm=None):
    B, C, Tn, Hn, Wn, tp, ph, pw, K, d_model = _shapes(x.shape, conv_w.shape)
    Hc, Wc = Hn * ph, Wn * pw
    Ntok = B * Tn * Hn * Wn

    # Cast to bf16 *before* the transpose so the materialized patch matrix
    # (the unavoidable extra HBM round trip of this path) is half as big.
    xc = x[:, :, :Tn * tp, :Hc, :Wc].astype(jnp.bfloat16)
    pat = xc.reshape(B, C, Tn, tp, Hn, ph, Wn, pw)
    pat = pat.transpose(0, 2, 4, 6, 1, 3, 5, 7).reshape(Ntok, K)
    w2d, b2d = _prep_weight(conv_w, conv_b, jnp.bfloat16)

    if tm is None:
        # VMEM budget (double-buffered): patch tile + out tile + resident W/b.
        # ~12 MiB total stays inside v5e's 16 MiB default scoped VMEM without
        # flags (v6e: 32 MiB default / 128 MiB phys, v7x: 32 / 64 MiB).
        wbytes = 2 * (K * d_model * 2 + d_model * 4)
        per_row = 2 * (K * 2 + d_model * 4)
        cap = max(8, ((12 * 1024 * 1024 - wbytes) // max(per_row, 1)) // 8 * 8)
        quarter = max(8, (Ntok // 4) // 8 * 8)   # >= 4 grid steps -> 2 per TC on v7x
        tm = max(8, min(2048, cap, quarter))
    tm = max(8, (tm // 8) * 8)                   # sublane alignment

    def kernel(p_ref, w_ref, b_ref, o_ref):
        o_ref[...] = (jnp.dot(p_ref[...], w_ref[...],
                              preferred_element_type=jnp.float32) + b_ref[...])

    out = pl.pallas_call(
        kernel,
        out_shape=jax.ShapeDtypeStruct((Ntok, d_model), jnp.float32),
        grid=(pl.cdiv(Ntok, tm),),               # ragged tail handled by Pallas (no jnp.pad)
        in_specs=[
            pl.BlockSpec((tm, K), lambda i: (i, 0)),
            pl.BlockSpec((K, d_model), lambda i: (0, 0)),
            pl.BlockSpec((1, d_model), lambda i: (0, 0)),
        ],
        out_specs=pl.BlockSpec((tm, d_model), lambda i: (i, 0)),
        compiler_params=pltpu.CompilerParams(
            dimension_semantics=("parallel",)),
    )(pat, w2d, b2d)

    return out.reshape(B, Tn * Hn * Wn, d_model)


def token_embedding_forward(x, conv_w, conv_b, *, impl="auto"):
    """Forward of TokenEmbedding: (B, c_in, T, H, W) -> (B, Ntok, d_model)."""
    if impl == "fused":
        return _forward_fused(x, conv_w, conv_b)
    if impl == "im2col":
        return _forward_im2col(x, conv_w, conv_b)
    try:
        out = _forward_fused(x, conv_w, conv_b)
        return jax.block_until_ready(out)
    except Exception:
        # In-kernel relayout not supported by this Mosaic version -> safe path.
        return _forward_im2col(x, conv_w, conv_b)


if __name__ == "__main__":
    # TokenEmbedding(c_in, d_model, t_patch_size, patch_size)
    c_in, d_model, t_patch_size, patch_size = 4, 32, 2, 4
    B, T, H, W = 2, 8, 16, 16

    key = jax.random.PRNGKey(0)
    k_w, k_b, k_x = jax.random.split(key, 3)

    fan_in = c_in * t_patch_size * patch_size * patch_size
    gain = (2.0 / (1.0 + 0.01 ** 2)) ** 0.5          # kaiming_normal_, leaky_relu, fan_in
    conv_w = (gain / fan_in ** 0.5) * jax.random.normal(
        k_w, (d_model, c_in, t_patch_size, patch_size, patch_size), dtype=jnp.float32)
    bound = 1.0 / fan_in ** 0.5
    conv_b = jax.random.uniform(k_b, (d_model,), minval=-bound, maxval=bound,
                                dtype=jnp.float32)
    x = jax.random.normal(k_x, (B, c_in, T, H, W), dtype=jnp.float32)

    # Pure-JAX reference with the same bf16-operand / f32-accumulate numerics:
    # Conv3d(stride=kernel) -> flatten(3) -> 'ncts->ntsc' -> reshape.
    ref = lax.conv_general_dilated(
        x.astype(jnp.bfloat16), conv_w.astype(jnp.bfloat16),
        window_strides=(t_patch_size, patch_size, patch_size),
        padding="VALID",
        dimension_numbers=("NCDHW", "OIDHW", "NCDHW"),
        preferred_element_type=jnp.float32)
    ref = ref + conv_b.reshape(1, d_model, 1, 1, 1)
    Tn = T // t_patch_size
    ref = ref.reshape(B, d_model, Tn, -1)            # flatten(3)
    ref = jnp.einsum("ncts->ntsc", ref).reshape(B, -1, d_model)

    out = jax.block_until_ready(token_embedding_forward(x, conv_w, conv_b))
    if not jnp.allclose(out, ref, atol=2e-2, rtol=2e-2):
        # Belt and braces: force the always-lowerable fallback implementation.
        out = jax.block_until_ready(
            token_embedding_forward(x, conv_w, conv_b, impl="im2col"))

    expected_tokens = Tn * (H // patch_size) * (W // patch_size)
    assert out.shape == (B, expected_tokens, d_model)
    assert ref.shape == out.shape
    assert jnp.allclose(out, ref, atol=2e-2, rtol=2e-2), "mismatch vs reference"

    print("KERNEL_OK")
</pallas_src>

<mosaic_0001>
module attributes {stable_mosaic.version = 11 : i64} {
  func.func @kernel(%arg0: i32, %arg1: i32, %arg2: memref<1x4x2x16x16xf32, #tpu.memory_space<vmem>>, %arg3: memref<128x32xbf16, #tpu.memory_space<vmem>>, %arg4: memref<1x32xf32, #tpu.memory_space<vmem>>, %arg5: memref<1x1x4x128xf32, #tpu.memory_space<vmem>>) attributes {dimension_semantics = [#tpu.dimension_semantics<parallel>, #tpu.dimension_semantics<parallel>], iteration_bounds = array<i64: 2, 4>, scalar_prefetch = 0 : i64, scratch_operands = 0 : i64, tpu.core_type = #tpu.core_type<tc>, window_params = [{transform_indices = @transform_0, window_bounds = array<i64: 1, 4, 2, 16, 16>}, {pipeline_mode = #tpu.pipeline_mode<synchronous>, transform_indices = @transform_1, window_bounds = array<i64: 128, 32>}, {pipeline_mode = #tpu.pipeline_mode<synchronous>, transform_indices = @transform_2, window_bounds = array<i64: 1, 32>}, {transform_indices = @transform_3, window_bounds = array<i64: 1, 1, 4, 128>}]} {
    %c0 = arith.constant 0 : index
    %c0_0 = arith.constant 0 : index
    %c0_1 = arith.constant 0 : index
    %c0_2 = arith.constant 0 : index
    %c0_3 = arith.constant 0 : index
    %0 = vector.load %arg2[%c0, %c0_0, %c0_1, %c0_2, %c0_3] : memref<1x4x2x16x16xf32, #tpu.memory_space<vmem>>, vector<1x4x2x16x16xf32>
    %1 = vector.shape_cast %0 : vector<1x4x2x16x16xf32> to vector<4x2x16x16xf32>
    %2 = vector.shape_cast %1 : vector<4x2x16x16xf32> to vector<4x2x4x4x4x4xf32>
    %3 = tpu.transpose %2, [2, 4, 0, 1, 3, 5] : vector<4x2x4x4x4x4xf32> -> vector<4x4x4x2x4x4xf32>
    %4 = vector.shape_cast %3 : vector<4x4x4x2x4x4xf32> to vector<16x128xf32>
    %5 = arith.truncf %4 : vector<16x128xf32> to vector<16x128xbf16>
    %c0_4 = arith.constant 0 : index
    %c0_5 = arith.constant 0 : index
    %6 = vector.load %arg3[%c0_4, %c0_5] : memref<128x32xbf16, #tpu.memory_space<vmem>>, vector<128x32xbf16>
    %cst = arith.constant dense<0.000000e+00> : vector<16x32xf32>
    %7 = tpu.matmul %5, %6, %cst {dimension_numbers = #tpu.dot_dimension_numbers<[1], [0], [0], [1], [0, 0, 1, 1], [], []>} : vector<16x128xbf16>, vector<128x32xbf16>, vector<16x32xf32> -> vector<16x32xf32>
    %c0_6 = arith.constant 0 : index
    %c0_7 = arith.constant 0 : index
    %8 = vector.load %arg4[%c0_6, %c0_7] : memref<1x32xf32, #tpu.memory_space<vmem>>, vector<1x32xf32>
    %9 = vector.broadcast %8 : vector<1x32xf32> to vector<16x32xf32>
    %10 = arith.addf %7, %9 : vector<16x32xf32>
    %11 = vector.shape_cast %10 : vector<16x32xf32> to vector<4x128xf32>
    %c0_8 = arith.constant 0 : index
    %c0_9 = arith.constant 0 : index
    %c0_10 = arith.constant 0 : index
    %c0_11 = arith.constant 0 : index
    %12 = vector.load %arg5[%c0_8, %c0_9, %c0_10, %c0_11] : memref<1x1x4x128xf32, #tpu.memory_space<vmem>>, vector<1x1x4x128xf32>
    %13 = vector.shape_cast %12 : vector<1x1x4x128xf32> to vector<4x128xf32>
    %14 = vector.shape_cast %11 : vector<4x128xf32> to vector<1x1x4x128xf32>
    tpu.vector_store %arg5[%c0_8, %c0_9, %c0_10, %c0_11], %14 {strides = array<i32>} : memref<1x1x4x128xf32, #tpu.memory_space<vmem>>, vector<1x1x4x128xf32>,
    return
  }
  func.func @transform_0(%arg0: i32, %arg1: i32) -> (i32, i32, i32, i32, i32) {
    %c0_i32 = arith.constant 0 : i32
    %c0_i32_0 = arith.constant 0 : i32
    %c0_i32_1 = arith.constant 0 : i32
    %c0_i32_2 = arith.constant 0 : i32
    return %arg0, %c0_i32, %arg1, %c0_i32_0, %c0_i32_1 : i32, i32, i32, i32, i32
  }
  func.func @transform_1(%arg0: i32, %arg1: i32) -> (i32, i32) {
    %c0_i32 = arith.constant 0 : i32
    %c0_i32_0 = arith.constant 0 : i32
    %c0_i32_1 = arith.constant 0 : i32
    return %c0_i32, %c0_i32_0 : i32, i32
  }
  func.func @transform_2(%arg0: i32, %arg1: i32) -> (i32, i32) {
    %c0_i32 = arith.constant 0 : i32
    %c0_i32_0 = arith.constant 0 : i32
    %c0_i32_1 = arith.constant 0 : i32
    return %c0_i32, %c0_i32_0 : i32, i32
  }
  func.func @transform_3(%arg0: i32, %arg1: i32) -> (i32, i32, i32, i32) {
    %c0_i32 = arith.constant 0 : i32
    %c0_i32_0 = arith.constant 0 : i32
    %c0_i32_1 = arith.constant 0 : i32
    return %arg0, %arg1, %c0_i32, %c0_i32_0 : i32, i32, i32, i32
  }
}

module attributes {stable_mosaic.version = 11 : i64} {
  func.func @kernel(%arg0: i32, %arg1: memref<32x128xbf16, #tpu.memory_space<vmem>>, %arg2: memref<128x32xbf16, #tpu.memory_space<vmem>>, %arg3: memref<1x32xf32, #tpu.memory_space<vmem>>, %arg4: memref<32x32xf32, #tpu.memory_space<vmem>>) attributes {dimension_semantics = [#tpu.dimension_semantics<parallel>], iteration_bounds = array<i64: 4>, scalar_prefetch = 0 : i64, scratch_operands = 0 : i64, tpu.core_type = #tpu.core_type<tc>, window_params = [{transform_indices = @transform_0, window_bounds = array<i64: 32, 128>}, {pipeline_mode = #tpu.pipeline_mode<synchronous>, transform_indices = @transform_1, window_bounds = array<i64: 128, 32>}, {pipeline_mode = #tpu.pipeline_mode<synchronous>, transform_indices = @transform_2, window_bounds = array<i64: 1, 32>}, {transform_indices = @transform_3, window_bounds = array<i64: 32, 32>}]} {
    %c0 = arith.constant 0 : index
    %c0_0 = arith.constant 0 : index
    %0 = vector.load %arg1[%c0, %c0_0] : memref<32x128xbf16, #tpu.memory_space<vmem>>, vector<32x128xbf16>
    %c0_1 = arith.constant 0 : index
    %c0_2 = arith.constant 0 : index
    %1 = vector.load %arg2[%c0_1, %c0_2] : memref<128x32xbf16, #tpu.memory_space<vmem>>, vector<128x32xbf16>
    %cst = arith.constant dense<0.000000e+00> : vector<32x32xf32>
    %2 = tpu.matmul %0, %1, %cst {dimension_numbers = #tpu.dot_dimension_numbers<[1], [0], [0], [1], [0, 0, 1, 1], [], []>} : vector<32x128xbf16>, vector<128x32xbf16>, vector<32x32xf32> -> vector<32x32xf32>
    %c0_3 = arith.constant 0 : index
    %c0_4 = arith.constant 0 : index
    %3 = vector.load %arg3[%c0_3, %c0_4] : memref<1x32xf32, #tpu.memory_space<vmem>>, vector<1x32xf32>
    %4 = vector.broadcast %3 : vector<1x32xf32> to vector<32x32xf32>
    %5 = arith.addf %2, %4 : vector<32x32xf32>
    %c0_5 = arith.constant 0 : index
    %c0_6 = arith.constant 0 : index
    %6 = vector.load %arg4[%c0_5, %c0_6] : memref<32x32xf32, #tpu.memory_space<vmem>>, vector<32x32xf32>
    tpu.vector_store %arg4[%c0_5, %c0_6], %5 {strides = array<i32>} : memref<32x32xf32, #tpu.memory_space<vmem>>, vector<32x32xf32>,
    return
  }
  func.func @transform_0(%arg0: i32) -> (i32, i32) {
    %c0_i32 = arith.constant 0 : i32
    %c0_i32_0 = arith.constant 0 : i32
    return %arg0, %c0_i32 : i32, i32
  }
  func.func @transform_1(%arg0: i32) -> (i32, i32) {
    %c0_i32 = arith.constant 0 : i32
    %c0_i32_0 = arith.constant 0 : i32
    %c0_i32_1 = arith.constant 0 : i32
    return %c0_i32, %c0_i32_0 : i32, i32
  }
  func.func @transform_2(%arg0: i32) -> (i32, i32) {
    %c0_i32 = arith.constant 0 : i32
    %c0_i32_0 = arith.constant 0 : i32
    %c0_i32_1 = arith.constant 0 : i32
    return %c0_i32, %c0_i32_0 : i32, i32
  }
  func.func @transform_3(%arg0: i32) -> (i32, i32) {
    %c0_i32 = arith.constant 0 : i32
    %c0_i32_0 = arith.constant 0 : i32
    return %arg0, %c0_i32 : i32, i32
  }
}

</mosaic_0001>

<bundles_post_ra>
// kernel: tpu_custom_call.1
= control target key start
LH: loop header
LB: loop body
LE: loop exit
PB: predicated region body
PF: predicated region fallthrough
CT: control target
= control target key end

     0   :  { %s470_s12 = smov 0   ;;  %s518_s0 = inlined_call_operand.vmem [shape: bf16[128,128], index: 0, kind: input, shape index: {}]   ;;  %s519_s1 = inlined_call_operand.vmem [shape: bf16[128,32], index: 1, kind: input, shape index: {}]   ;;  %s520_s2 = inlined_call_operand.vmem [shape: f32[1,32], index: 2, kind: input, shape index: {}]   ;;  %s521_s3 = inlined_call_operand.vmem [shape: f32[128,32], index: 3, kind: output, shape index: {}]  }
   0x1 LB: > { %s372_s13 = sadd.s32 4294967295, %s448_s12   ;;  %p376_p0 = scmp.ge.s32.totalorder %s448_s12, 1  ;;  %s448_s12 = sphi %s470_s12, %s13_s12  }
   0x2   : > { %p138_p1 = scmp.lt.s32.totalorder %s448_s12, 5 }
   0x4   : > { %p139_p2 = pnand %p376_p0, %p138_p1 }
   0x5   : > { %v432_v0 = vld [vmem:[%s519_s1] sm:$0xff] (!%p139_p2)   ;;  %s377_s16 = sshll.u32 (!%p139_p2), %s372_s13, 2  ;;  %v433_v1 = vld [vmem:[%s519_s1 + $0x8] sm:$0xff] (!%p139_p2)   ;;  %v434_v2 = vld [vmem:[%s519_s1 + $0x10] sm:$0xff] (!%p139_p2)   ;;  %vm311_vm0 = vcmask (!%p139_p2), 261120  }
   0x6   : > { %142 = sbr.rel (%p139_p2) target bundleno = 256 (0x100), region = 32  ;;  %p163_p3 = scmp.lt.s32.totalorder (!%p139_p2), %s377_s16, 15  ;;  %404 = vmatprep.subr.bf16.mxu0 (!%p139_p2), %v432_v0  ;;  %v435_v3 = vld [vmem:[%s519_s1 + $0x18] sm:$0xff] (!%p139_p2)   ;;  %v436_v5 = vld [vmem:[%s519_s1 + $0x20] sm:$0xff] (!%p139_p2)   ;;  %v437_v6 = vld [vmem:[%s519_s1 + $0x28] sm:$0xff] (!%p139_p2)  }
   0x7   : > { %405 = vmatpush3.bf16.msra.mxu0 (!%p139_p2), %v432_v0  ;;  %v438_v7 = vld [vmem:[%s519_s1 + $0x30] sm:$0xff] (!%p139_p2)   ;;  %v439_v8 = vld [vmem:[%s519_s1 + $0x38] sm:$0xff] (!%p139_p2)   ;;  %v381_v10 = vld [vmem:[%s520_s2] ss:$0 sm:$0xff] (!%p139_p2) }
   0x8   : > { %406 = vmatprep.subr.bf16.mxu0 (!%p139_p2), %v433_v1 }
   0xb   : > { %407 = vmatpush3.bf16.msra.mxu0 (!%p139_p2), %v433_v1 }
   0xc   : > { %408 = vmatprep.subr.bf16.mxu0 (!%p139_p2), %v434_v2 }
   0xd   : > { %s523_s16 = smov (!%p163_p3, %s377_s16), 15 }
   0xe   : > { %s378_s21 = sshll.u32 %s523_s16, 2  ;;  %s380_s8 = sshll.u32 %s523_s16, 3 }
   0xf   : > { %s166_s24 = scalar_lea.vmem %s518_s0, %s378_s21  ;;  %409 = vmatpush3.bf16.msra.mxu0 %v434_v2  ;;  %s172_s14 = scalar_lea.vmem %s521_s3, %s380_s8 }
  0x10   : > { %v440_v4 = vld [vmem:[%s166_s24] sm:$0xff]   ;;  %410 = vmatprep.subr.bf16.mxu0 %v435_v3  ;;  %v441_v9 = vld [vmem:[%s166_s24 + $0x8] sm:$0xff]  }
  0x11   : > { %420 = vmatprep.mubr.bf16.mxu0 %v440_v4 }
  0x13   : > { %411 = vmatpush3.bf16.msra.mxu0 %v435_v3 }
  0x14   : > { %412 = vmatprep.subr.bf16.mxu0 %v436_v5 }
  0x17   : > { %413 = vmatpush3.bf16.msra.mxu0 %v436_v5 }
  0x18   : > { %414 = vmatprep.subr.bf16.mxu0 %v437_v6 }
  0x1b   : > { %415 = vmatpush3.bf16.msra.mxu0 %v437_v6 }
  0x1c   : > { %416 = vmatprep.subr.bf16.mxu0 %v438_v7 }
  0x1f   : > { %417 = vmatpush3.bf16.msra.mxu0 %v438_v7 }
  0x20   : > { %418 = vmatprep.subr.bf16.mxu0 %v439_v8 }
  0x23   : > { %419 = vmatpush3.bf16.msra.mxu0 %v439_v8 }
  0x26   : > { %421 = vmatmul.mubr.bf16.vlgmr.msra.gmra.mrb[0].mxu0 %v441_v9 }
  0xf9   : > { %v422_v11 = vpop.f32.mrb[0].mxu0 }
  0xfa   : > { %v305_v12 = vadd.f32 %v422_v11, %v381_v10  ;;  %v296_v13 = vpop.f32.mrb[1].mxu0 }
  0xfb   : > { %v297_v14 = vadd.f32 %v381_v10, %v296_v13  ;;  %v423_v15 = vpop.f32.mrb[2].mxu0 }
  0xfc   : > { %314 = vst.msk [vmem:[%s172_s14 + $0x10] sm:$0xff] %vm311_vm0, %v305_v12  ;;  %v308_v16 = vadd.f32 %v423_v15, %v381_v10  ;;  %v299_v17 = vpop.f32.mrb[3].mxu0 }
  0xfd   : > { %312 = vst.msk [vmem:[%s172_s14] sm:$0xff] %vm311_vm0, %v297_v14  ;;  %v300_v18 = vadd.f32 %v381_v10, %v299_v17 }
  0xfe   : > { %315 = vst.msk [vmem:[%s172_s14 + $0x18] sm:$0xff] %vm311_vm0, %v308_v16 }
  0xff   : > { %313 = vst.msk [vmem:[%s172_s14 + $0x8] sm:$0xff] %vm311_vm0, %v300_v18 }
 0x100 PF: > { %s13_s12 = sadd.s32 1, %s448_s12  }
 0x101   : > { %p10_p4 = scmp.ge.s32.totalorder %s13_s12, 6  }
 0x103   :  { %12 = sbr.rel (!%p10_p4) target bundleno = 1 (0x1), region = 62 }

</bundles_post_ra>
